<compile_context>
chip_gen: v7x
topology: tpu7x:2x2x1
jax: 0.10.0
libtpu: 0.0.40
codegen_flags: <defaults>
</compile_context>

<pallas_src>
import math

import jax
import jax.numpy as jnp
from jax import lax
from jax.experimental import pallas as pl
from jax.experimental.pallas import tpu as pltpu


C_OUT = 3
KH = KW = 3


def conv3x3_kernel(w_ref, b_ref, x_ref, o_ref):
    """3x3 'same' conv, 1 input channel, C_OUT output channels, NB planes.

    w_ref: SMEM (C_OUT, KH*KW)     f32 weights
    b_ref: SMEM (C_OUT,)           f32 bias
    x_ref: VMEM (NB, H, W)         unpadded input planes (channel squeezed)
    o_ref: VMEM (NB, C_OUT, H, W)  output planes
    """
    NB, H, W = x_ref.shape

    # Fold the 'same' zero-padding into the kernel: build the halo-padded
    # (NB, H+2, W+2) planes in-register instead of a wrapper-side jnp.pad.
    x = x_ref[...].astype(jnp.float32)                     # (NB, H, W)
    zcol = jnp.zeros((NB, H, 1), jnp.float32)
    xw = jnp.concatenate([zcol, x, zcol], axis=2)          # (NB, H, W+2)
    zrow = jnp.zeros((NB, 1, W + 2), jnp.float32)
    xp = jnp.concatenate([zrow, xw, zrow], axis=1)         # (NB, H+2, W+2)

    # Tap-outer / channel-inner: each shifted window is materialised exactly
    # once and feeds all C_OUT accumulators (scalar weight * window).
    accs = [jnp.full((NB, H, W), b_ref[c], dtype=jnp.float32)
            for c in range(C_OUT)]
    for dh in range(KH):
        for dw in range(KW):
            tap = xp[:, dh:dh + H, dw:dw + W]              # (NB, H, W)
            for c in range(C_OUT):
                accs[c] = accs[c] + w_ref[c, dh * KW + dw] * tap

    # Single store of all channels for this block of planes.
    o_ref[...] = jnp.stack(accs, axis=1).astype(o_ref.dtype)


def _pick_block_batch(N, H, W, budget_bytes=8 * 1024 * 1024):
    """Largest divisor of N whose (double-buffered) block fits a safe VMEM budget."""
    # in block (x2 for double buffering) + out block (x2) + padded working set
    per_plane = 4 * (2 * H * W + 2 * C_OUT * H * W + (H + 2) * (W + 2))
    nb_cap = max(1, min(N, budget_bytes // max(per_plane, 1)))
    for nb in range(min(nb_cap, N), 0, -1):
        if N % nb == 0:
            return nb
    return 1


def resnet50_first_layer(x_nchw, weight, bias):
    """x_nchw: (N, 1, H, W), weight: (C_OUT, 1, 3, 3), bias: (C_OUT,)."""
    N, C_in, H, W = x_nchw.shape
    assert C_in == 1
    x = x_nchw[:, 0, :, :]                                  # (N, H, W) — no pad here
    w_flat = weight[:, 0, :, :].reshape(C_OUT, KH * KW).astype(jnp.float32)
    b = bias.astype(jnp.float32)

    NB = _pick_block_batch(N, H, W)
    grid = (N // NB,)

    itemsize = x_nchw.dtype.itemsize
    flops = 2 * N * C_OUT * H * W * KH * KW
    bytes_accessed = (N * H * W + N * C_OUT * H * W) * itemsize \
        + (w_flat.size + b.size) * 4

    out = pl.pallas_call(
        conv3x3_kernel,
        out_shape=jax.ShapeDtypeStruct((N, C_OUT, H, W), x_nchw.dtype),
        grid=grid,
        in_specs=[
            pl.BlockSpec(memory_space=pltpu.MemorySpace.SMEM),  # weights (whole)
            pl.BlockSpec(memory_space=pltpu.MemorySpace.SMEM),  # bias (whole)
            pl.BlockSpec((NB, H, W), lambda n: (n, 0, 0)),
        ],
        out_specs=pl.BlockSpec((NB, C_OUT, H, W), lambda n: (n, 0, 0, 0)),
        compiler_params=pltpu.CompilerParams(
            dimension_semantics=("parallel",),
            vmem_limit_bytes=32 * 1024 * 1024,
        ),
        cost_estimate=pl.CostEstimate(
            flops=flops, transcendentals=0, bytes_accessed=bytes_accessed),
    )(w_flat, b, x)
    return out


def _reference_conv(x_nchw, weight, bias):
    y = lax.conv_general_dilated(
        x_nchw, weight,
        window_strides=(1, 1),
        padding="SAME",
        dimension_numbers=("NCHW", "OIHW", "NCHW"),
    )
    return y + bias.reshape(1, C_OUT, 1, 1)


if __name__ == "__main__":
    key = jax.random.PRNGKey(0)
    k_x, k_w = jax.random.split(key)

    # Small shapes consistent with the module: N=2, C_in=1, H=W=16.
    N, H, W = 2, 16, 16
    x = jax.random.normal(k_x, (N, 1, H, W), dtype=jnp.float32)

    # Deterministic init matching the module's _initialize_weights intent:
    # weight ~ N(0, sqrt(2/n)) with n = kh*kw*out_channels, bias = 0.
    n_fan = KH * KW * C_OUT
    weight = jax.random.normal(k_w, (C_OUT, 1, KH, KW), dtype=jnp.float32) * math.sqrt(2.0 / n_fan)
    bias = jnp.zeros((C_OUT,), dtype=jnp.float32)

    out = resnet50_first_layer(x, weight, bias)
    out = jax.block_until_ready(out)

    ref = _reference_conv(x, weight, bias)
    assert out.shape == (N, C_OUT, H, W)
    assert jnp.allclose(out, ref, atol=1e-5, rtol=1e-5), "mismatch vs reference conv"

    print("KERNEL_OK")
</pallas_src>

<mosaic_0001>
module attributes {stable_mosaic.version = 11 : i64} {
  func.func @conv3x3_kernel(%arg0: i32, %arg1: memref<3x9xf32, #tpu.memory_space<smem>>, %arg2: memref<3xf32, #tpu.memory_space<smem>>, %arg3: memref<2x16x16xf32, #tpu.memory_space<vmem>>, %arg4: memref<2x3x16x16xf32, #tpu.memory_space<vmem>>) attributes {dimension_semantics = [#tpu.dimension_semantics<parallel>], iteration_bounds = array<i64: 1>, scalar_prefetch = 0 : i64, scratch_operands = 0 : i64, tpu.core_type = #tpu.core_type<tc>, window_params = [{transform_indices = @transform_0, window_bounds = array<i64: 3, 9>}, {transform_indices = @transform_1, window_bounds = array<i64: 3>}, {transform_indices = @transform_2, window_bounds = array<i64: 2, 16, 16>}, {transform_indices = @transform_3, window_bounds = array<i64: 2, 3, 16, 16>}]} {
    %c0 = arith.constant 0 : index
    %c0_0 = arith.constant 0 : index
    %c0_1 = arith.constant 0 : index
    %0 = vector.load %arg3[%c0, %c0_0, %c0_1] : memref<2x16x16xf32, #tpu.memory_space<vmem>>, vector<2x16x16xf32>
    %cst = arith.constant 0.000000e+00 : f32
    %1 = vector.broadcast %cst : f32 to vector<2x16x1xf32>
    %2 = tpu.concatenate %1, %0, %1 in 2 : vector<2x16x1xf32>, vector<2x16x16xf32>, vector<2x16x1xf32> -> vector<2x16x18xf32>
    %cst_2 = arith.constant 0.000000e+00 : f32
    %3 = vector.broadcast %cst_2 : f32 to vector<2x1x18xf32>
    %4 = tpu.concatenate %3, %2, %3 in 1 : vector<2x1x18xf32>, vector<2x16x18xf32>, vector<2x1x18xf32> -> vector<2x18x18xf32>
    %c0_3 = arith.constant 0 : index
    %5 = memref.load %arg2[%c0_3] : memref<3xf32, #tpu.memory_space<smem>>
    %6 = vector.broadcast %5 : f32 to vector<2x16x16xf32>
    %c1 = arith.constant 1 : index
    %7 = memref.load %arg2[%c1] : memref<3xf32, #tpu.memory_space<smem>>
    %8 = vector.broadcast %7 : f32 to vector<2x16x16xf32>
    %c2 = arith.constant 2 : index
    %9 = memref.load %arg2[%c2] : memref<3xf32, #tpu.memory_space<smem>>
    %10 = vector.broadcast %9 : f32 to vector<2x16x16xf32>
    %11 = vector.extract_strided_slice %4 {offsets = [0, 0, 0], sizes = [2, 16, 16], strides = [1, 1, 1]} : vector<2x18x18xf32> to vector<2x16x16xf32>
    %c0_4 = arith.constant 0 : index
    %c0_5 = arith.constant 0 : index
    %12 = memref.load %arg1[%c0_4, %c0_5] : memref<3x9xf32, #tpu.memory_space<smem>>
    %13 = vector.broadcast %12 : f32 to vector<2x16x16xf32>
    %14 = arith.mulf %13, %11 : vector<2x16x16xf32>
    %15 = arith.addf %6, %14 : vector<2x16x16xf32>
    %c1_6 = arith.constant 1 : index
    %c0_7 = arith.constant 0 : index
    %16 = memref.load %arg1[%c1_6, %c0_7] : memref<3x9xf32, #tpu.memory_space<smem>>
    %17 = vector.broadcast %16 : f32 to vector<2x16x16xf32>
    %18 = arith.mulf %17, %11 : vector<2x16x16xf32>
    %19 = arith.addf %8, %18 : vector<2x16x16xf32>
    %c2_8 = arith.constant 2 : index
    %c0_9 = arith.constant 0 : index
    %20 = memref.load %arg1[%c2_8, %c0_9] : memref<3x9xf32, #tpu.memory_space<smem>>
    %21 = vector.broadcast %20 : f32 to vector<2x16x16xf32>
    %22 = arith.mulf %21, %11 : vector<2x16x16xf32>
    %23 = arith.addf %10, %22 : vector<2x16x16xf32>
    %24 = vector.extract_strided_slice %4 {offsets = [0, 0, 1], sizes = [2, 16, 16], strides = [1, 1, 1]} : vector<2x18x18xf32> to vector<2x16x16xf32>
    %c0_10 = arith.constant 0 : index
    %c1_11 = arith.constant 1 : index
    %25 = memref.load %arg1[%c0_10, %c1_11] : memref<3x9xf32, #tpu.memory_space<smem>>
    %26 = vector.broadcast %25 : f32 to vector<2x16x16xf32>
    %27 = arith.mulf %26, %24 : vector<2x16x16xf32>
    %28 = arith.addf %15, %27 : vector<2x16x16xf32>
    %c1_12 = arith.constant 1 : index
    %c1_13 = arith.constant 1 : index
    %29 = memref.load %arg1[%c1_12, %c1_13] : memref<3x9xf32, #tpu.memory_space<smem>>
    %30 = vector.broadcast %29 : f32 to vector<2x16x16xf32>
    %31 = arith.mulf %30, %24 : vector<2x16x16xf32>
    %32 = arith.addf %19, %31 : vector<2x16x16xf32>
    %c2_14 = arith.constant 2 : index
    %c1_15 = arith.constant 1 : index
    %33 = memref.load %arg1[%c2_14, %c1_15] : memref<3x9xf32, #tpu.memory_space<smem>>
    %34 = vector.broadcast %33 : f32 to vector<2x16x16xf32>
    %35 = arith.mulf %34, %24 : vector<2x16x16xf32>
    %36 = arith.addf %23, %35 : vector<2x16x16xf32>
    %37 = vector.extract_strided_slice %4 {offsets = [0, 0, 2], sizes = [2, 16, 16], strides = [1, 1, 1]} : vector<2x18x18xf32> to vector<2x16x16xf32>
    %c0_16 = arith.constant 0 : index
    %c2_17 = arith.constant 2 : index
    %38 = memref.load %arg1[%c0_16, %c2_17] : memref<3x9xf32, #tpu.memory_space<smem>>
    %39 = vector.broadcast %38 : f32 to vector<2x16x16xf32>
    %40 = arith.mulf %39, %37 : vector<2x16x16xf32>
    %41 = arith.addf %28, %40 : vector<2x16x16xf32>
    %c1_18 = arith.constant 1 : index
    %c2_19 = arith.constant 2 : index
    %42 = memref.load %arg1[%c1_18, %c2_19] : memref<3x9xf32, #tpu.memory_space<smem>>
    %43 = vector.broadcast %42 : f32 to vector<2x16x16xf32>
    %44 = arith.mulf %43, %37 : vector<2x16x16xf32>
    %45 = arith.addf %32, %44 : vector<2x16x16xf32>
    %c2_20 = arith.constant 2 : index
    %c2_21 = arith.constant 2 : index
    %46 = memref.load %arg1[%c2_20, %c2_21] : memref<3x9xf32, #tpu.memory_space<smem>>
    %47 = vector.broadcast %46 : f32 to vector<2x16x16xf32>
    %48 = arith.mulf %47, %37 : vector<2x16x16xf32>
    %49 = arith.addf %36, %48 : vector<2x16x16xf32>
    %50 = vector.extract_strided_slice %4 {offsets = [0, 1, 0], sizes = [2, 16, 16], strides = [1, 1, 1]} : vector<2x18x18xf32> to vector<2x16x16xf32>
    %c0_22 = arith.constant 0 : index
    %c3 = arith.constant 3 : index
    %51 = memref.load %arg1[%c0_22, %c3] : memref<3x9xf32, #tpu.memory_space<smem>>
    %52 = vector.broadcast %51 : f32 to vector<2x16x16xf32>
    %53 = arith.mulf %52, %50 : vector<2x16x16xf32>
    %54 = arith.addf %41, %53 : vector<2x16x16xf32>
    %c1_23 = arith.constant 1 : index
    %c3_24 = arith.constant 3 : index
    %55 = memref.load %arg1[%c1_23, %c3_24] : memref<3x9xf32, #tpu.memory_space<smem>>
    %56 = vector.broadcast %55 : f32 to vector<2x16x16xf32>
    %57 = arith.mulf %56, %50 : vector<2x16x16xf32>
    %58 = arith.addf %45, %57 : vector<2x16x16xf32>
    %c2_25 = arith.constant 2 : index
    %c3_26 = arith.constant 3 : index
    %59 = memref.load %arg1[%c2_25, %c3_26] : memref<3x9xf32, #tpu.memory_space<smem>>
    %60 = vector.broadcast %59 : f32 to vector<2x16x16xf32>
    %61 = arith.mulf %60, %50 : vector<2x16x16xf32>
    %62 = arith.addf %49, %61 : vector<2x16x16xf32>
    %63 = vector.extract_strided_slice %4 {offsets = [0, 1, 1], sizes = [2, 16, 16], strides = [1, 1, 1]} : vector<2x18x18xf32> to vector<2x16x16xf32>
    %c0_27 = arith.constant 0 : index
    %c4 = arith.constant 4 : index
    %64 = memref.load %arg1[%c0_27, %c4] : memref<3x9xf32, #tpu.memory_space<smem>>
    %65 = vector.broadcast %64 : f32 to vector<2x16x16xf32>
    %66 = arith.mulf %65, %63 : vector<2x16x16xf32>
    %67 = arith.addf %54, %66 : vector<2x16x16xf32>
    %c1_28 = arith.constant 1 : index
    %c4_29 = arith.constant 4 : index
    %68 = memref.load %arg1[%c1_28, %c4_29] : memref<3x9xf32, #tpu.memory_space<smem>>
    %69 = vector.broadcast %68 : f32 to vector<2x16x16xf32>
    %70 = arith.mulf %69, %63 : vector<2x16x16xf32>
    %71 = arith.addf %58, %70 : vector<2x16x16xf32>
    %c2_30 = arith.constant 2 : index
    %c4_31 = arith.constant 4 : index
    %72 = memref.load %arg1[%c2_30, %c4_31] : memref<3x9xf32, #tpu.memory_space<smem>>
    %73 = vector.broadcast %72 : f32 to vector<2x16x16xf32>
    %74 = arith.mulf %73, %63 : vector<2x16x16xf32>
    %75 = arith.addf %62, %74 : vector<2x16x16xf32>
    %76 = vector.extract_strided_slice %4 {offsets = [0, 1, 2], sizes = [2, 16, 16], strides = [1, 1, 1]} : vector<2x18x18xf32> to vector<2x16x16xf32>
    %c0_32 = arith.constant 0 : index
    %c5 = arith.constant 5 : index
    %77 = memref.load %arg1[%c0_32, %c5] : memref<3x9xf32, #tpu.memory_space<smem>>
    %78 = vector.broadcast %77 : f32 to vector<2x16x16xf32>
    %79 = arith.mulf %78, %76 : vector<2x16x16xf32>
    %80 = arith.addf %67, %79 : vector<2x16x16xf32>
    %c1_33 = arith.constant 1 : index
    %c5_34 = arith.constant 5 : index
    %81 = memref.load %arg1[%c1_33, %c5_34] : memref<3x9xf32, #tpu.memory_space<smem>>
    %82 = vector.broadcast %81 : f32 to vector<2x16x16xf32>
    %83 = arith.mulf %82, %76 : vector<2x16x16xf32>
    %84 = arith.addf %71, %83 : vector<2x16x16xf32>
    %c2_35 = arith.constant 2 : index
    %c5_36 = arith.constant 5 : index
    %85 = memref.load %arg1[%c2_35, %c5_36] : memref<3x9xf32, #tpu.memory_space<smem>>
    %86 = vector.broadcast %85 : f32 to vector<2x16x16xf32>
    %87 = arith.mulf %86, %76 : vector<2x16x16xf32>
    %88 = arith.addf %75, %87 : vector<2x16x16xf32>
    %89 = vector.extract_strided_slice %4 {offsets = [0, 2, 0], sizes = [2, 16, 16], strides = [1, 1, 1]} : vector<2x18x18xf32> to vector<2x16x16xf32>
    %c0_37 = arith.constant 0 : index
    %c6 = arith.constant 6 : index
    %90 = memref.load %arg1[%c0_37, %c6] : memref<3x9xf32, #tpu.memory_space<smem>>
    %91 = vector.broadcast %90 : f32 to vector<2x16x16xf32>
    %92 = arith.mulf %91, %89 : vector<2x16x16xf32>
    %93 = arith.addf %80, %92 : vector<2x16x16xf32>
    %c1_38 = arith.constant 1 : index
    %c6_39 = arith.constant 6 : index
    %94 = memref.load %arg1[%c1_38, %c6_39] : memref<3x9xf32, #tpu.memory_space<smem>>
    %95 = vector.broadcast %94 : f32 to vector<2x16x16xf32>
    %96 = arith.mulf %95, %89 : vector<2x16x16xf32>
    %97 = arith.addf %84, %96 : vector<2x16x16xf32>
    %c2_40 = arith.constant 2 : index
    %c6_41 = arith.constant 6 : index
    %98 = memref.load %arg1[%c2_40, %c6_41] : memref<3x9xf32, #tpu.memory_space<smem>>
    %99 = vector.broadcast %98 : f32 to vector<2x16x16xf32>
    %100 = arith.mulf %99, %89 : vector<2x16x16xf32>
    %101 = arith.addf %88, %100 : vector<2x16x16xf32>
    %102 = vector.extract_strided_slice %4 {offsets = [0, 2, 1], sizes = [2, 16, 16], strides = [1, 1, 1]} : vector<2x18x18xf32> to vector<2x16x16xf32>
    %c0_42 = arith.constant 0 : index
    %c7 = arith.constant 7 : index
    %103 = memref.load %arg1[%c0_42, %c7] : memref<3x9xf32, #tpu.memory_space<smem>>
    %104 = vector.broadcast %103 : f32 to vector<2x16x16xf32>
    %105 = arith.mulf %104, %102 : vector<2x16x16xf32>
    %106 = arith.addf %93, %105 : vector<2x16x16xf32>
    %c1_43 = arith.constant 1 : index
    %c7_44 = arith.constant 7 : index
    %107 = memref.load %arg1[%c1_43, %c7_44] : memref<3x9xf32, #tpu.memory_space<smem>>
    %108 = vector.broadcast %107 : f32 to vector<2x16x16xf32>
    %109 = arith.mulf %108, %102 : vector<2x16x16xf32>
    %110 = arith.addf %97, %109 : vector<2x16x16xf32>
    %c2_45 = arith.constant 2 : index
    %c7_46 = arith.constant 7 : index
    %111 = memref.load %arg1[%c2_45, %c7_46] : memref<3x9xf32, #tpu.memory_space<smem>>
    %112 = vector.broadcast %111 : f32 to vector<2x16x16xf32>
    %113 = arith.mulf %112, %102 : vector<2x16x16xf32>
    %114 = arith.addf %101, %113 : vector<2x16x16xf32>
    %115 = vector.extract_strided_slice %4 {offsets = [0, 2, 2], sizes = [2, 16, 16], strides = [1, 1, 1]} : vector<2x18x18xf32> to vector<2x16x16xf32>
    %c0_47 = arith.constant 0 : index
    %c8 = arith.constant 8 : index
    %116 = memref.load %arg1[%c0_47, %c8] : memref<3x9xf32, #tpu.memory_space<smem>>
    %117 = vector.broadcast %116 : f32 to vector<2x16x16xf32>
    %118 = arith.mulf %117, %115 : vector<2x16x16xf32>
    %119 = arith.addf %106, %118 : vector<2x16x16xf32>
    %c1_48 = arith.constant 1 : index
    %c8_49 = arith.constant 8 : index
    %120 = memref.load %arg1[%c1_48, %c8_49] : memref<3x9xf32, #tpu.memory_space<smem>>
    %121 = vector.broadcast %120 : f32 to vector<2x16x16xf32>
    %122 = arith.mulf %121, %115 : vector<2x16x16xf32>
    %123 = arith.addf %110, %122 : vector<2x16x16xf32>
    %c2_50 = arith.constant 2 : index
    %c8_51 = arith.constant 8 : index
    %124 = memref.load %arg1[%c2_50, %c8_51] : memref<3x9xf32, #tpu.memory_space<smem>>
    %125 = vector.broadcast %124 : f32 to vector<2x16x16xf32>
    %126 = arith.mulf %125, %115 : vector<2x16x16xf32>
    %127 = arith.addf %114, %126 : vector<2x16x16xf32>
    %128 = vector.shape_cast %119 : vector<2x16x16xf32> to vector<2x1x16x16xf32>
    %129 = vector.shape_cast %123 : vector<2x16x16xf32> to vector<2x1x16x16xf32>
    %130 = vector.shape_cast %127 : vector<2x16x16xf32> to vector<2x1x16x16xf32>
    %131 = tpu.concatenate %128, %129, %130 in 1 : vector<2x1x16x16xf32>, vector<2x1x16x16xf32>, vector<2x1x16x16xf32> -> vector<2x3x16x16xf32>
    %c0_52 = arith.constant 0 : index
    %c0_53 = arith.constant 0 : index
    %c0_54 = arith.constant 0 : index
    %c0_55 = arith.constant 0 : index
    %132 = vector.load %arg4[%c0_52, %c0_53, %c0_54, %c0_55] : memref<2x3x16x16xf32, #tpu.memory_space<vmem>>, vector<2x3x16x16xf32>
    tpu.vector_store %arg4[%c0_52, %c0_53, %c0_54, %c0_55], %131 {strides = array<i32>} : memref<2x3x16x16xf32, #tpu.memory_space<vmem>>, vector<2x3x16x16xf32>,
    return
  }
  func.func @transform_0(%arg0: i32) -> (i32, i32) {
    %c0_i32 = arith.constant 0 : i32
    %c0_i32_0 = arith.constant 0 : i32
    %c0_i32_1 = arith.constant 0 : i32
    return %c0_i32, %c0_i32_0 : i32, i32
  }
  func.func @transform_1(%arg0: i32) -> i32 {
    %c0_i32 = arith.constant 0 : i32
    %c0_i32_0 = arith.constant 0 : i32
    return %c0_i32 : i32
  }
  func.func @transform_2(%arg0: i32) -> (i32, i32, i32) {
    %c0_i32 = arith.constant 0 : i32
    %c0_i32_0 = arith.constant 0 : i32
    %c0_i32_1 = arith.constant 0 : i32
    return %arg0, %c0_i32, %c0_i32_0 : i32, i32, i32
  }
  func.func @transform_3(%arg0: i32) -> (i32, i32, i32, i32) {
    %c0_i32 = arith.constant 0 : i32
    %c0_i32_0 = arith.constant 0 : i32
    %c0_i32_1 = arith.constant 0 : i32
    %c0_i32_2 = arith.constant 0 : i32
    return %arg0, %c0_i32, %c0_i32_0, %c0_i32_1 : i32, i32, i32, i32
  }
}

</mosaic_0001>

<bundles_post_ra>
// kernel: tpu_custom_call.1
= control target key start
LH: loop header
LB: loop body
LE: loop exit
PB: predicated region body
PF: predicated region fallthrough
CT: control target
= control target key end

     0   :  { %8 = vsyncpa [#allocation5], 0  ;;  %s1670_s0 = inlined_call_operand.hbm [shape: f32[3,9], index: 0, kind: input, shape index: {}]   ;;  %s1671_s1 = inlined_call_operand.vmem [shape: f32[3], index: 1, kind: input, shape index: {}]   ;;  %s1672_s2 = inlined_call_operand.hbm [shape: f32[2,16,16], index: 2, kind: input, shape index: {}]   ;;  %s1673_s3 = inlined_call_operand.hbm [shape: f32[2,3,16,16], index: 3, kind: output, shape index: {}]  }
   0x1   :  { %9 = vsyncpa [#allocation6], 0 }
   0x2   :  { %10 = vsyncpa [#allocation3], 0 }
   0x3   :  { %11 = vsyncpa [#allocation4], 0  ;;  %s26_s14 = sshll.u32 %s1671_s1, 4  ;;  %s1038_s17 = scalar_lea.hbm %s1670_s0, 64  ;;  %s27_s14 = int_to_ptr.vmem [resolvable:$true] %s26_s14 }
   0x4   :  { %p1039_p0 = scmp.ne.s32.totalorder %s1670_s0, %s1038_s17  ;;  %p1042_p1 = scmp.lt.u32.totalorder %s1038_s17, %s1670_s0 }
   0x6   :  { %p1044_p2 = pnand %p1042_p1, %p1039_p0 }
   0x8   :  { %1047 = shalt.err (!%p1044_p2)
}
   0x9   :  { %s1112_s22 = smov [#allocation2]   ;;  %s1048_s1 = scalar_lea.vmem %s27_s14, 16 }
   0xa   :  { %19 = dma.hbm_to_smem %s1670_s0, 64, %s1112_s22, [#allocation5]  }
   0xb   :  { %p1049_p3 = scmp.ne.s32.totalorder %s27_s14, %s1048_s1  ;;  %p1053_p4 = scmp.lt.s32.totalorder %s27_s14, %s27_s14 }
   0xc   :  { %p1054_p5 = scmp.lt.s32.totalorder %s1048_s1, %s1048_s1 }
   0xe   :  { %p1055_p6 = por %p1054_p5, %p1053_p4 }
  0x10   :  { %p1056_p7 = pnand %p1055_p6, %p1049_p3 }
  0x12   :  { %1059 = shalt.err (!%p1056_p7)
}
  0x13   :  { %s1113_s25 = smov [#allocation7]   ;;  %s1114_s26 = smov [#allocation8]  }
  0x14   :  { %29 = dma.vmem_to_smem %s27_s14, 16, %s1113_s25, [#allocation6]  }
  0x15   :  { %s35_s27 = sshll.u32 %s1114_s26, 4  ;;  %s1060_s30 = scalar_lea.hbm %s1672_s2, 512  ;;  %s36_s27 = int_to_ptr.vmem [resolvable:$true] %s35_s27 }
  0x16   :  { %p1061_p8 = scmp.ne.s32.totalorder %s1672_s2, %s1060_s30  ;;  %p1064_p9 = scmp.lt.u32.totalorder %s1060_s30, %s1672_s2 }
  0x18   :  { %p1066_p10 = pnand %p1064_p9, %p1061_p8 }
  0x1a   :  { %1069 = shalt.err (!%p1066_p10)
}
  0x1b   :  { %s1070_s7 = scalar_lea.vmem %s36_s27, 512  ;;  %p1075_p12 = scmp.lt.s32.totalorder %s36_s27, %s36_s27 }
  0x1c   :  { %p1071_p11 = scmp.ne.s32.totalorder %s36_s27, %s1070_s7  ;;  %p1076_p13 = scmp.lt.s32.totalorder %s1070_s7, %s1070_s7 }
  0x1e   :  { %p1077_p0 = por %p1076_p13, %p1075_p12 }
  0x20   :  { %p1078_p1 = pnand %p1077_p0, %p1071_p11 }
  0x22   :  { %1081 = shalt.err (!%p1078_p1)
}
  0x23   :  { %s1115_s8 = smov 128   ;;  %s1116_s9 = smov 8  }
  0x24   :  { %41 = dma.hbm_to_vmem [thread:$0]  %s1672_s2, 512, %s36_s27, [#allocation3], %s1115_s8, %s1115_s8, %s1116_s9  }
  0x25   :  { %1104 = dma.done.wait [#allocation5], 64  }
  0x26   :  { %1105 = vsyncadd [#allocation5], 4294967232 }
  0x27   :  { %1106 = dma.done.wait [#allocation6], 16  }
  0x28   :  { %1107 = vsyncadd [#allocation6], 4294967280 }
  0x29   :  { %1108 = dma.done.wait [#allocation3], 512  }
  0x2a   :  { %1109 = vsyncadd [#allocation3], 4294966784 }
  0x2b   :  { %51 = sfence }
  0x2c   :  { %v54_v0 = vld [vmem:[#allocation8 + $0x10] sm:$0xff]  ;;  %v52_v1 = vld [vmem:[#allocation8] sm:$0xff]  ;;  %s1117_s12 = smov 1   ;;  %v55_v2 = vld [vmem:[#allocation8 + $0x18] sm:$0xff]  ;;  %s1005_s13 = sld [smem:[#allocation2 + $0x1]]  ;;  %vm72_vm0 = vcmask 7168  }
  0x2d   :  { %64 = vrot.lane.b32.xlu1 %v54_v0, %s1117_s12  ;;  %60 = vrot.lane.b32.xlu0 %v52_v1, %s1117_s12  ;;  %v53_v3 = vld [vmem:[#allocation8 + $0x8] sm:$0xff]  ;;  %vm77_vm1 = vcmask 138240   ;;  %vm86_vm2 = vcmask 1040384   ;;  %s1006_s2 = sld [smem:[#allocation2 + $0x81]]  ;;  %s1118_s14 = smov 127   ;;  %vm309_vm3 = vcmask 1046528  }
  0x2e   :  { %s1007_s15 = sld [smem:[#allocation2 + $0x101]]  ;;  %s1008_s16 = sld [smem:[#allocation2 + $0x2]]  ;;  %vm646_vm4 = vcmask 1045504   ;;  %vm969_vm5 = vcmask 130048  }
  0x2f   :  { %s1009_s17 = sld [smem:[#allocation2 + $0x82]]  ;;  %s1119_s18 = smov 126  }
  0x30   :  { %s1010_s19 = sld [smem:[#allocation2 + $0x102]]  ;;  %s1014_s20 = sld [smem:[#allocation2 + $0x4]] }
  0x31   :  { %66 = vrot.lane.b32.xlu1 %v55_v2, %s1117_s12  ;;  %62 = vrot.lane.b32.xlu0 %v53_v3, %s1117_s12  ;;  %s1015_s21 = sld [smem:[#allocation2 + $0x84]]  ;;  %s1017_s23 = sld [smem:[#allocation2 + $0x5]] }
  0x32   :  { %v140_v12 = vstv %s1005_s13  ;;  %s1016_s22 = sld [smem:[#allocation2 + $0x104]]  ;;  %s1018_s24 = sld [smem:[#allocation2 + $0x85]] }
  0x33   :  { %v166_v28 = vstv %s1006_s2  ;;  %s1019_s1 = sld [smem:[#allocation2 + $0x105]]  ;;  %s1023_s25 = sld [smem:[#allocation2 + $0x7]] }
  0x34   :  { %v192_v33 = vstv %s1007_s15  ;;  %v218_v38 = vstv %s1008_s16  ;;  %s1024_s26 = sld [smem:[#allocation2 + $0x87]]  ;;  %s1026_s28 = sld [smem:[#allocation2 + $0x8]] }
  0x35   :  { %v244_v43 = vstv %s1009_s17  ;;  %s1025_s27 = sld [smem:[#allocation2 + $0x107]]  ;;  %s1027_s29 = sld [smem:[#allocation2 + $0x88]] }
  0x36   :  { %v270_v48 = vstv %s1010_s19  ;;  %v393_v51 = vstv %s1014_s20  ;;  %s1374_s30 = sld [smem:[#allocation2]]  ;;  %s1387_s5 = sld [smem:[#allocation7 + $0x1]] }
  0x37   :  { %v433_v63 = vstv %s1015_s21  ;;  %s1383_s4 = sld [smem:[#allocation7]]  ;;  %s1404_s7 = sld [smem:[#allocation7 + $0x2]] }
  0x38   :  { %s1389_s0 = sld [smem:[#allocation2 + $0x80]]  ;;  %s1408_s11 = sld [smem:[#allocation2 + $0x3]] }
  0x39   :  { %s1398_s6 = sld [smem:[#allocation2 + $0x108]]  ;;  %s1410_s12 = sld [smem:[#allocation2 + $0x83]] }
  0x3a   :  { %s1406_s10 = sld [smem:[#allocation2 + $0x100]]  ;;  %s1424_s13 = sld [smem:[#allocation2 + $0x103]] }
  0x3b   :  { %s1020_s2 = sld [smem:[#allocation2 + $0x6]]  ;;  %s1120_s16 = smov [#allocation9]  }
  0x3c   :  { %s1022_s15 = sld [smem:[#allocation2 + $0x106]]  ;;  %s987_s17 = sshll.u32 %s1120_s16, 4  ;;  %s988_s17 = int_to_ptr.vmem [resolvable:$true] %s987_s17 }
  0x3d   :  { %p1087_p3 = scmp.lt.s32.totalorder %s988_s17, %s988_s17 }
  0x9f   :  { %v65_v4 = vpop.permute.xlu1 %64  ;;  %v61_v5 = vpop.permute.xlu0 %60 }
  0xa0   :  { %v75_v6 = vsel %vm72_vm0, 0.0, %v65_v4  ;;  %v73_v7 = vsel %vm72_vm0, 0.0, %v61_v5 }
  0xa1   :  { %v80_v8 = vsel %vm77_vm1, %v75_v6, 0.0  ;;  %v78_v9 = vsel %vm77_vm1, %v73_v7, 0.0 }
  0xa2   :  { %v90_v10 = vrot.slane %v80_v8, 7  ;;  %v87_v11 = vrot.slane %v78_v9, 7 }
  0xa3   :  { %v67_v13 = vpop.permute.xlu1 %66  ;;  %v63_v14 = vpop.permute.xlu0 %62 }
  0xa4   :  { %v1176_v15 = vsel %vm86_vm2, 0.0, %v90_v10  ;;  %v1179_v16 = vsel %vm86_vm2, 0.0, %v87_v11  ;;  %v76_v17 = vsel %vm72_vm0, 0.0, %v67_v13  ;;  %v74_v18 = vsel %vm72_vm0, 0.0, %v63_v14 }
  0xa5   :  { %v1184_v19 = vsel %vm77_vm1, %v76_v17, 0.0  ;;  %v79_v20 = vsel %vm77_vm1, %v74_v18, 0.0  ;;  %v141_v21 = vmul.f32 %v140_v12, %v1179_v16  ;;  %v143_v24 = vmul.f32 %v140_v12, %v1176_v15 }
  0xa6   :  { %v91_v22 = vrot.slane %v1184_v19, 7  ;;  %v88_v23 = vrot.slane %v79_v20, 7  ;;  %v167_v29 = vmul.f32 %v166_v28, %v1179_v16  ;;  %v169_v31 = vmul.f32 %v166_v28, %v1176_v15 }
  0xa7   :  { %149 = vrot.lane.b32.xlu0 %v141_v21, %s1118_s14  ;;  %v193_v34 = vmul.f32 %v192_v33, %v1179_v16  ;;  %v195_v36 = vmul.f32 %v192_v33, %v1176_v15  ;;  %v219_v39 = vmul.f32 %v218_v38, %v1179_v16  ;;  %v221_v41 = vmul.f32 %v218_v38, %v1176_v15 }
  0xa8   :  { %v1192_v25 = vsel %vm86_vm2, %v87_v11, %v88_v23  ;;  %v1198_v27 = vsel %vm86_vm2, %v90_v10, %v91_v22  ;;  %v245_v44 = vmul.f32 %v244_v43, %v1179_v16  ;;  %v247_v46 = vmul.f32 %v244_v43, %v1176_v15 }
  0xa9   :  { %v142_v26 = vmul.f32 %v140_v12, %v1192_v25  ;;  %v144_v30 = vmul.f32 %v140_v12, %v1198_v27  ;;  %v168_v32 = vmul.f32 %v166_v28, %v1192_v25  ;;  %v170_v35 = vmul.f32 %v166_v28, %v1198_v27 }
  0xaa   :  { %v194_v37 = vmul.f32 %v192_v33, %v1192_v25  ;;  %v196_v40 = vmul.f32 %v192_v33, %v1198_v27  ;;  %v220_v42 = vmul.f32 %v218_v38, %v1192_v25  ;;  %v222_v45 = vmul.f32 %v218_v38, %v1198_v27 }
  0xab   :  { %153 = vrot.lane.b32.xlu0 %v143_v24, %s1118_s14  ;;  %151 = vrot.lane.b32.xlu1 %v142_v26, %s1118_s14  ;;  %v246_v47 = vmul.f32 %v244_v43, %v1192_v25  ;;  %v271_v49 = vmul.f32 %v270_v48, %v1179_v16  ;;  %v248_v50 = vmul.f32 %v244_v43, %v1198_v27  ;;  %v1238_v53 = vsel %vm86_vm2, %v88_v23, 0.0 }
  0xac   :  { %v395_v52 = vmul.f32 %v393_v51, %v1192_v25  ;;  %v394_v54 = vmul.f32 %v393_v51, %v1179_v16  ;;  %v273_v55 = vmul.f32 %v270_v48, %v1176_v15  ;;  %v272_v56 = vmul.f32 %v270_v48, %v1192_v25 }
  0xad   :  { %v397_v57 = vmul.f32 %v393_v51, %v1176_v15  ;;  %v398_v59 = vmul.f32 %v393_v51, %v1198_v27  ;;  %v396_v60 = vmul.f32 %v393_v51, %v1238_v53  ;;  %v1251_v61 = vsel %vm86_vm2, %v91_v22, 0.0 }
  0xae   :  { %v407_v58 = vrot.slane %v395_v52, 1  ;;  %v406_v62 = vrot.slane %v394_v54, 1  ;;  %v274_v0 = vmul.f32 %v270_v48, %v1198_v27  ;;  %v435_v2 = vmul.f32 %v433_v63, %v1192_v25 }
  0xaf   :  { %175 = vrot.lane.b32.xlu0 %v167_v29, %s1118_s14  ;;  %155 = vrot.lane.b32.xlu1 %v144_v30, %s1118_s14  ;;  %v411_v1 = vrot.slane %v397_v57, 1  ;;  %v412_v4 = vrot.slane %v398_v59, 1  ;;  %v409_v5 = vrot.slane %v396_v60, 1  ;;  %v399_v6 = vmul.f32 %v393_v51, %v1251_v61 }
  0xb0   :  { %v408_v3 = vsel %vm309_vm3, %v406_v62, %v407_v58  ;;  %v434_v7 = vmul.f32 %v433_v63, %v1179_v16  ;;  %v447_v8 = vrot.slane %v435_v2, 1  ;;  %v437_v9 = vmul.f32 %v433_v63, %v1176_v15 }
  0xb1   :  { %v438_v10 = vmul.f32 %v433_v63, %v1198_v27  ;;  %v413_v11 = vsel %vm309_vm3, %v411_v1, %v412_v4  ;;  %v410_v12 = vsel %vm309_vm3, %v407_v58, %v409_v5  ;;  %v414_v13 = vrot.slane %v399_v6, 1 }
  0xb2   :  { %v436_v14 = vmul.f32 %v433_v63, %v1238_v53  ;;  %v446_v17 = vrot.slane %v434_v7, 1  ;;  %v451_v19 = vrot.slane %v437_v9, 1  ;;  %v473_v21 = vstv %s1016_s22 }
  0xb3   :  { %179 = vrot.lane.b32.xlu0 %v169_v31, %s1118_s14  ;;  %177 = vrot.lane.b32.xlu1 %v168_v32, %s1118_s14  ;;  %v452_v20 = vrot.slane %v438_v10, 1  ;;  %v415_v22 = vsel %vm309_vm3, %v412_v4, %v414_v13  ;;  %v475_v24 = vmul.f32 %v473_v21, %v1192_v25  ;;  %v439_v26 = vmul.f32 %v433_v63, %v1251_v61 }
  0xb4   :  { %v448_v18 = vsel %vm309_vm3, %v446_v17, %v447_v8  ;;  %v449_v23 = vrot.slane %v436_v14, 1  ;;  %v474_v28 = vmul.f32 %v473_v21, %v1179_v16  ;;  %v477_v30 = vmul.f32 %v473_v21, %v1176_v15 }
  0xb5   :  { %v453_v29 = vsel %vm309_vm3, %v451_v19, %v452_v20  ;;  %v478_v31 = vmul.f32 %v473_v21, %v1198_v27  ;;  %v487_v33 = vrot.slane %v475_v24, 1 }
  0xb6   :  { %v450_v32 = vsel %vm309_vm3, %v447_v8, %v449_v23  ;;  %v491_v38 = vrot.slane %v477_v30, 1  ;;  %v730_v30 = vstv %s1023_s25 }
  0xb7   :  { %201 = vrot.lane.b32.xlu0 %v193_v34, %s1118_s14  ;;  %181 = vrot.lane.b32.xlu1 %v170_v35, %s1118_s14  ;;  %v454_v34 = vrot.slane %v439_v26, 1  ;;  %v476_v35 = vmul.f32 %v473_v21, %v1238_v53 }
  0xb9   :  { %v489_v43 = vrot.slane %v476_v35, 1 }
  0xbb   :  { %205 = vrot.lane.b32.xlu0 %v195_v36, %s1118_s14  ;;  %203 = vrot.lane.b32.xlu1 %v194_v37, %s1118_s14  ;;  %v486_v36 = vrot.slane %v474_v28, 1  ;;  %v513_v37 = vstv %s1017_s23 }
  0xbc   :  { %v517_v48 = vmul.f32 %v513_v37, %v1176_v15  ;;  %v518_v51 = vmul.f32 %v513_v37, %v1198_v27  ;;  %v516_v52 = vmul.f32 %v513_v37, %v1238_v53  ;;  %v519_v63 = vmul.f32 %v513_v37, %v1251_v61 }
  0xbe   :  { %v531_v57 = vrot.slane %v517_v48, 1  ;;  %v532_v60 = vrot.slane %v518_v51, 1  ;;  %v529_v62 = vrot.slane %v516_v52, 1  ;;  %v534_v6 = vrot.slane %v519_v63, 1 }
  0xbf   :  { %227 = vrot.lane.b32.xlu0 %v219_v39, %s1119_s18  ;;  %207 = vrot.lane.b32.xlu1 %v196_v40, %s1118_s14  ;;  %v492_v39 = vrot.slane %v478_v31, 1  ;;  %v515_v40 = vmul.f32 %v513_v37, %v1192_v25 }
  0xc0   :  { %v533_v4 = vsel %vm309_vm3, %v531_v57, %v532_v60  ;;  %v535_v13 = vsel %vm309_vm3, %v532_v60, %v534_v6 }
  0xc3   :  { %231 = vrot.lane.b32.xlu0 %v221_v41, %s1119_s18  ;;  %229 = vrot.lane.b32.xlu1 %v220_v42, %s1119_s18  ;;  %v488_v41 = vsel %vm309_vm3, %v486_v36, %v487_v33  ;;  %v455_v42 = vsel %vm309_vm3, %v452_v20, %v454_v34 }
  0xc7   :  { %253 = vrot.lane.b32.xlu0 %v245_v44, %s1119_s18  ;;  %233 = vrot.lane.b32.xlu1 %v222_v45, %s1119_s18  ;;  %v479_v44 = vmul.f32 %v473_v21, %v1251_v61  ;;  %v514_v45 = vmul.f32 %v513_v37, %v1179_v16 }
  0xc9   :  { %v526_v54 = vrot.slane %v514_v45, 1  ;;  %v733_v45 = vmul.f32 %v730_v30, %v1238_v53 }
  0xcb   :  { %257 = vrot.lane.b32.xlu0 %v247_v46, %s1119_s18  ;;  %255 = vrot.lane.b32.xlu1 %v246_v47, %s1119_s18  ;;  %v493_v46 = vsel %vm309_vm3, %v491_v38, %v492_v39  ;;  %v527_v47 = vrot.slane %v515_v40, 1  ;;  %v731_v38 = vmul.f32 %v730_v30, %v1179_v16 }
  0xcd   :  { %v530_v5 = vsel %vm309_vm3, %v527_v47, %v529_v62 }
  0xcf   :  { %279 = vrot.lane.b32.xlu0 %v271_v49, %s1119_s18  ;;  %259 = vrot.lane.b32.xlu1 %v248_v50, %s1119_s18  ;;  %v490_v49 = vsel %vm309_vm3, %v487_v33, %v489_v43  ;;  %v494_v50 = vrot.slane %v479_v44, 1  ;;  %v732_v33 = vmul.f32 %v730_v30, %v1192_v25  ;;  %v735_v44 = vmul.f32 %v730_v30, %v1198_v27 }
  0xd1   :  { %v495_v59 = vsel %vm309_vm3, %v492_v39, %v494_v50  ;;  %v744_v40 = vrot.slane %v732_v33, 2  ;;  %v749_v52 = vrot.slane %v735_v44, 2 }
  0xd3   :  { %283 = vrot.lane.b32.xlu0 %v273_v55, %s1119_s18  ;;  %281 = vrot.lane.b32.xlu1 %v272_v56, %s1119_s18  ;;  %v553_v55 = vstv %s1018_s24  ;;  %v528_v56 = vsel %vm309_vm3, %v526_v54, %v527_v47  ;;  %v770_v47 = vstv %s1024_s26  ;;  %v746_v54 = vrot.slane %v733_v45, 2 }
  0xd4   :  { %v555_v58 = vmul.f32 %v553_v55, %v1192_v25  ;;  %v557_v2 = vmul.f32 %v553_v55, %v1176_v15  ;;  %v556_v7 = vmul.f32 %v553_v55, %v1238_v53  ;;  %v772_v50 = vmul.f32 %v770_v47, %v1192_v25 }
  0xd5   :  { %v747_v62 = vsel %vm646_vm4, %v744_v40, %v746_v54 }
  0xd6   :  { %v567_v1 = vrot.slane %v555_v58, 1  ;;  %v571_v10 = vrot.slane %v557_v2, 1  ;;  %v569_v14 = vrot.slane %v556_v7, 1  ;;  %v784_v57 = vrot.slane %v772_v50, 2 }
  0xd7   :  { %416 = vrot.lane.b32.xlu0 %v408_v3, %s1118_s14  ;;  %285 = vrot.lane.b32.xlu1 %v274_v0, %s1119_s18  ;;  %v554_v0 = vmul.f32 %v553_v55, %v1179_v16  ;;  %v558_v3 = vmul.f32 %v553_v55, %v1198_v27  ;;  %v774_v58 = vmul.f32 %v770_v47, %v1176_v15 }
  0xd8   :  { %v570_v23 = vsel %vm309_vm3, %v567_v1, %v569_v14 }
  0xd9   :  { %v566_v8 = vrot.slane %v554_v0, 1  ;;  %v773_v0 = vmul.f32 %v770_v47, %v1238_v53 }
  0xdb   :  { %420 = vrot.lane.b32.xlu0 %v413_v11, %s1118_s14  ;;  %418 = vrot.lane.b32.xlu1 %v410_v12, %s1118_s14  ;;  %v568_v9 = vsel %vm309_vm3, %v566_v8, %v567_v1  ;;  %v572_v11 = vrot.slane %v558_v3, 1  ;;  %v593_v12 = vstv %s1019_s1  ;;  %v788_v3 = vrot.slane %v774_v58, 2 }
  0xdc   :  { %v595_v17 = vmul.f32 %v593_v12, %v1192_v25  ;;  %v594_v19 = vmul.f32 %v593_v12, %v1179_v16  ;;  %v597_v21 = vmul.f32 %v593_v12, %v1176_v15  ;;  %v596_v28 = vmul.f32 %v593_v12, %v1238_v53 }
  0xdd   :  { %v573_v20 = vsel %vm309_vm3, %v571_v10, %v572_v11  ;;  %v599_v37 = vmul.f32 %v593_v12, %v1251_v61  ;;  %v786_v7 = vrot.slane %v773_v0, 2 }
  0xde   :  { %v607_v24 = vrot.slane %v595_v17, 1  ;;  %v611_v31 = vrot.slane %v597_v21, 1  ;;  %v609_v36 = vrot.slane %v596_v28, 1  ;;  %v850_v21 = vstv %s1026_s28 }
  0xdf   :  { %456 = vrot.lane.b32.xlu0 %v448_v18, %s1118_s14  ;;  %422 = vrot.lane.b32.xlu1 %v415_v22, %s1118_s14  ;;  %v559_v18 = vmul.f32 %v553_v55, %v1251_v61  ;;  %v598_v22 = vmul.f32 %v593_v12, %v1198_v27  ;;  %v614_v43 = vrot.slane %v599_v37, 1  ;;  %v736_v55 = vmul.f32 %v730_v30, %v1251_v61 }
  0xe0   :  { %v787_v14 = vsel %vm646_vm4, %v784_v57, %v786_v7  ;;  %v854_v37 = vmul.f32 %v850_v21, %v1176_v15  ;;  %v856_v50 = vmul.f32 %v850_v21, %v1251_v61 }
  0xe1   :  { %v574_v26 = vrot.slane %v559_v18, 1  ;;  %v751_v63 = vrot.slane %v736_v55, 2 }
  0xe3   :  { %460 = vrot.lane.b32.xlu0 %v453_v29, %s1118_s14  ;;  %458 = vrot.lane.b32.xlu1 %v450_v32, %s1118_s14  ;;  %v606_v29 = vrot.slane %v594_v19, 1  ;;  %v612_v32 = vrot.slane %v598_v22, 1  ;;  %v575_v35 = vsel %vm309_vm3, %v572_v11, %v574_v26  ;;  %v752_v6 = vsel %vm646_vm4, %v749_v52, %v751_v63 }
  0xe5   :  { %v608_v34 = vsel %vm309_vm3, %v606_v29, %v607_v24  ;;  %v613_v39 = vsel %vm309_vm3, %v611_v31, %v612_v32  ;;  %v615_v51 = vsel %vm309_vm3, %v612_v32, %v614_v43  ;;  %v851_v31 = vmul.f32 %v850_v21, %v1179_v16 }
  0xe7   :  { %496 = vrot.lane.b32.xlu0 %v488_v41, %s1118_s14  ;;  %462 = vrot.lane.b32.xlu1 %v455_v42, %s1118_s14  ;;  %v734_v41 = vmul.f32 %v730_v30, %v1176_v15  ;;  %v610_v42 = vsel %vm309_vm3, %v607_v24, %v609_v36  ;;  %v852_v24 = vmul.f32 %v850_v21, %v1192_v25 }
  0xeb   :  { %500 = vrot.lane.b32.xlu0 %v493_v46, %s1118_s14  ;;  %498 = vrot.lane.b32.xlu1 %v490_v49, %s1118_s14  ;;  %v743_v46 = vrot.slane %v731_v38, 2  ;;  %v748_v49 = vrot.slane %v734_v41, 2  ;;  %v855_v38 = vmul.f32 %v850_v21, %v1198_v27  ;;  %v890_v41 = vstv %s1027_s29 }
  0xec   :  { %v895_v58 = vmul.f32 %v890_v41, %v1198_v27  ;;  %v893_v63 = vmul.f32 %v890_v41, %v1238_v53 }
  0xed   :  { %v745_v48 = vsel %vm646_vm4, %v743_v46, %v744_v40  ;;  %v750_v60 = vsel %vm646_vm4, %v748_v49, %v749_v52  ;;  %v863_v40 = vrot.slane %v851_v31, 2  ;;  %v892_v46 = vmul.f32 %v890_v41, %v1192_v25 }
  0xee   :  { %v110_v52 = vstv %s1374_s30 }
  0xef   :  { %536 = vrot.lane.b32.xlu0 %v528_v56, %s1119_s18  ;;  %502 = vrot.lane.b32.xlu1 %v495_v59, %s1118_s14  ;;  %v771_v56 = vmul.f32 %v770_v47, %v1179_v16  ;;  %v775_v59 = vmul.f32 %v770_v47, %v1198_v27 }
  0xf1   :  { %v783_v1 = vrot.slane %v771_v56, 2  ;;  %v904_v56 = vrot.slane %v892_v46, 2 }
  0xf3   :  { %540 = vrot.lane.b32.xlu0 %v533_v4, %s1119_s18  ;;  %538 = vrot.lane.b32.xlu1 %v530_v5, %s1119_s18  ;;  %v785_v2 = vsel %vm646_vm4, %v783_v1, %v784_v57  ;;  %v789_v4 = vrot.slane %v775_v59, 2  ;;  %v810_v5 = vstv %s1025_s27  ;;  %v894_v57 = vmul.f32 %v890_v41, %v1176_v15 }
  0xf4   :  { %v812_v8 = vmul.f32 %v810_v5, %v1192_v25  ;;  %v811_v10 = vmul.f32 %v810_v5, %v1179_v16  ;;  %v814_v12 = vmul.f32 %v810_v5, %v1176_v15  ;;  %v813_v19 = vmul.f32 %v810_v5, %v1238_v53 }
  0xf5   :  { %v790_v11 = vsel %vm646_vm4, %v788_v3, %v789_v4  ;;  %v816_v26 = vmul.f32 %v810_v5, %v1251_v61  ;;  %v104_v1 = vstv %s1383_s4  ;;  %v1429_v3 = vstv %s1387_s5 }
  0xf6   :  { %v824_v17 = vrot.slane %v812_v8, 2  ;;  %v828_v22 = vrot.slane %v814_v12, 2  ;;  %v826_v30 = vrot.slane %v813_v19, 2  ;;  %v908_v8 = vrot.slane %v894_v57, 2 }
  0xf7   :  { %576 = vrot.lane.b32.xlu0 %v568_v9, %s1119_s18  ;;  %542 = vrot.lane.b32.xlu1 %v535_v13, %s1119_s18  ;;  %v776_v9 = vmul.f32 %v770_v47, %v1251_v61  ;;  %v815_v13 = vmul.f32 %v810_v5, %v1198_v27  ;;  %v868_v47 = vrot.slane %v854_v37, 2  ;;  %v906_v12 = vrot.slane %v893_v63, 2 }
  0xf8   :  { %v827_v36 = vsel %vm646_vm4, %v824_v17, %v826_v30  ;;  %v1450_v19 = vstv %s1406_s10 }
  0xf9   :  { %v791_v18 = vrot.slane %v776_v9, 2  ;;  %v909_v9 = vrot.slane %v895_v58, 2 }
  0xfb   :  { %580 = vrot.lane.b32.xlu0 %v573_v20, %s1119_s18  ;;  %578 = vrot.lane.b32.xlu1 %v570_v23, %s1119_s18  ;;  %v823_v20 = vrot.slane %v811_v10, 2  ;;  %v829_v23 = vrot.slane %v815_v13, 2  ;;  %v792_v29 = vsel %vm646_vm4, %v789_v4, %v791_v18  ;;  %v1432_v4 = vstv %s1389_s0 }
  0xfc   :  { %v930_v10 = vstv %s1398_s6  ;;  %v1447_v18 = vstv %s1404_s7 }
  0xfd   :  { %v825_v28 = vsel %vm646_vm4, %v823_v20, %v824_v17  ;;  %v830_v33 = vsel %vm646_vm4, %v828_v22, %v829_v23  ;;  %v932_v13 = vmul.f32 %v930_v10, %v1192_v25  ;;  %v112_v17 = vmul.f32 %v110_v52, %v1192_v25 }
  0xfe   :  { %v296_v22 = vstv %s1408_s11  ;;  %v934_v30 = vmul.f32 %v930_v10, %v1176_v15  ;;  %v935_v31 = vmul.f32 %v930_v10, %v1198_v27 }
  0xff   :  { %616 = vrot.lane.b32.xlu0 %v608_v34, %s1119_s18  ;;  %582 = vrot.lane.b32.xlu1 %v575_v35, %s1119_s18  ;;  %v864_v34 = vrot.slane %v852_v24, 2  ;;  %v831_v35 = vrot.slane %v816_v26, 2  ;;  %v113_v24 = vmul.f32 %v110_v52, %v1176_v15  ;;  %v116_v37 = vadd.f32 %v112_v17, %v104_v1 }
 0x100   :  { %v300_v63 = vmul.f32 %v296_v22, %v1176_v15 }
 0x101   :  { %v865_v44 = vsel %vm646_vm4, %v863_v40, %v864_v34  ;;  %v832_v45 = vsel %vm646_vm4, %v829_v23, %v831_v35  ;;  %v1455_v23 = vstv %s1410_s12  ;;  %v1472_v40 = vstv %s1424_s13 }
 0x103   :  { %620 = vrot.lane.b32.xlu0 %v613_v39, %s1119_s18  ;;  %618 = vrot.lane.b32.xlu1 %v610_v42, %s1119_s18  ;;  %v853_v39 = vmul.f32 %v850_v21, %v1238_v53  ;;  %v931_v21 = vmul.f32 %v930_v10, %v1179_v16 }
 0x105   :  { %v866_v49 = vrot.slane %v853_v39, 2  ;;  %v298_v39 = vmul.f32 %v296_v22, %v1192_v25  ;;  %v943_v46 = vrot.slane %v931_v21, 2 }
 0x107   :  { %753 = vrot.lane.b32.xlu0 %v745_v48, %s1118_s14  ;;  %622 = vrot.lane.b32.xlu1 %v615_v51, %s1119_s18  ;;  %v869_v48 = vrot.slane %v855_v38, 2  ;;  %v891_v51 = vmul.f32 %v890_v41, %v1179_v16  ;;  %v114_v38 = vmul.f32 %v110_v52, %v1198_v27 }
 0x109   :  { %v870_v59 = vsel %vm646_vm4, %v868_v47, %v869_v48  ;;  %v903_v0 = vrot.slane %v891_v51, 2  ;;  %v936_v51 = vmul.f32 %v930_v10, %v1251_v61 }
 0x10b   :  { %757 = vrot.lane.b32.xlu0 %v750_v60, %s1118_s14  ;;  %755 = vrot.lane.b32.xlu1 %v747_v62, %s1118_s14  ;;  %v867_v60 = vsel %vm646_vm4, %v864_v34, %v866_v49  ;;  %v871_v62 = vrot.slane %v856_v50, 2  ;;  %v905_v7 = vsel %vm646_vm4, %v903_v0, %v904_v56  ;;  %v944_v34 = vrot.slane %v932_v13, 2 }
 0x10c   :  { %v948_v49 = vrot.slane %v934_v30, 2  ;;  %v949_v50 = vrot.slane %v935_v31, 2  ;;  %v301_v0 = vmul.f32 %v296_v22, %v1198_v27  ;;  %v331_v31 = vmul.f32 %v1455_v23, %v1192_v25 }
 0x10e   :  { %v950_v13 = vsel %vm646_vm4, %v948_v49, %v949_v50  ;;  %v316_v30 = vrot.slane %v301_v0, 1  ;;  %v343_v49 = vrot.slane %v331_v31, 1  ;;  %v362_v31 = vmul.f32 %v1472_v40, %v1179_v16 }
 0x10f   :  { %793 = vrot.lane.b32.xlu0 %v785_v2, %s1118_s14  ;;  %759 = vrot.lane.b32.xlu1 %v752_v6, %s1118_s14  ;;  %v111_v2 = vmul.f32 %v110_v52, %v1179_v16  ;;  %v297_v52 = vmul.f32 %v296_v22, %v1179_v16 }
 0x111   :  { %v115_v20 = vadd.f32 %v111_v2, %v104_v1  ;;  %v310_v17 = vrot.slane %v297_v52, 1 }
 0x113   :  { %797 = vrot.lane.b32.xlu0 %v790_v11, %s1118_s14  ;;  %795 = vrot.lane.b32.xlu1 %v787_v14, %s1118_s14  ;;  %v872_v11 = vsel %vm646_vm4, %v869_v48, %v871_v62  ;;  %v896_v14 = vmul.f32 %v890_v41, %v1251_v61  ;;  %v121_v41 = vmul.f32 %v1432_v4, %v1179_v16  ;;  %v311_v62 = vrot.slane %v298_v39, 1 }
 0x115   :  { %v911_v35 = vrot.slane %v896_v14, 2  ;;  %v951_v14 = vrot.slane %v936_v51, 2  ;;  %v333_v51 = vmul.f32 %v1455_v23, %v1176_v15 }
 0x117   :  { %833 = vrot.lane.b32.xlu0 %v825_v28, %s1118_s14  ;;  %799 = vrot.lane.b32.xlu1 %v792_v29, %s1118_s14  ;;  %v910_v29 = vsel %vm646_vm4, %v908_v8, %v909_v9  ;;  %v912_v57 = vsel %vm646_vm4, %v909_v9, %v911_v35  ;;  %v125_v8 = vadd.f32 %v121_v41, %v1429_v3 }
 0x118   :  { %v952_v41 = vsel %vm646_vm4, %v949_v50, %v951_v14  ;;  %v334_v50 = vmul.f32 %v1455_v23, %v1198_v27 }
 0x119   :  { %v1376_v32 = vpop.permute.xlu0 %149 }
 0x11a   :  { %v161_v2 = vadd.f32 %v1376_v32, %v115_v20  ;;  %v302_v32 = vmul.f32 %v296_v22, %v1251_v61  ;;  %v315_v20 = vrot.slane %v300_v63, 1 }
 0x11b   :  { %837 = vrot.lane.b32.xlu0 %v830_v33, %s1118_s14  ;;  %835 = vrot.lane.b32.xlu1 %v827_v36, %s1118_s14  ;;  %v907_v33 = vsel %vm646_vm4, %v904_v56, %v906_v12  ;;  %v933_v36 = vmul.f32 %v930_v10, %v1238_v53  ;;  %v945_v56 = vsel %vm646_vm4, %v943_v46, %v944_v34 }
 0x11c   :  { %v317_v46 = vsel %vm309_vm3, %v315_v20, %v316_v30 }
 0x11d   :  { %v1391_v42 = vpop.permute.xlu1 %151  ;;  %v1393_v43 = vpop.permute.xlu0 %153  ;;  %v946_v58 = vrot.slane %v933_v36, 2 }
 0x11f   :  { %873 = vrot.lane.b32.xlu0 %v865_v44, %s1119_s18  ;;  %839 = vrot.lane.b32.xlu1 %v832_v45, %s1118_s14  ;;  %v122_v44 = vmul.f32 %v1432_v4, %v1192_v25  ;;  %v123_v45 = vmul.f32 %v1432_v4, %v1176_v15  ;;  %s1021_s14 = sld [smem:[#allocation2 + $0x86]] }
 0x121   :  { %v1413_v54 = vpop.permute.xlu1 %155  ;;  %v1415_v55 = vpop.permute.xlu0 %175  ;;  %v126_v9 = vadd.f32 %v122_v44, %v1429_v3  ;;  %v127_v10 = vadd.f32 %v123_v45, %v1429_v3  ;;  %v330_v44 = vmul.f32 %v1455_v23, %v1179_v16 }
 0x123   :  { %877 = vrot.lane.b32.xlu0 %v870_v59, %s1119_s18  ;;  %875 = vrot.lane.b32.xlu1 %v867_v60, %s1119_s18  ;;  %v299_v59 = vmul.f32 %v296_v22, %v1238_v53  ;;  %v117_v60 = vadd.f32 %v113_v24, %v104_v1  ;;  %v947_v24 = vsel %vm646_vm4, %v944_v34, %v946_v58  ;;  %v342_v0 = vrot.slane %v330_v44, 1 }
 0x124   :  { %v124_v34 = vmul.f32 %v1432_v4, %v1198_v27  ;;  %v131_v22 = vmul.f32 %v1450_v19, %v1179_v16  ;;  %v318_v4 = vrot.slane %v302_v32, 1  ;;  %v132_v32 = vmul.f32 %v1450_v19, %v1192_v25 }
 0x125   :  { %v1434_v5 = vpop.permute.xlu1 %177  ;;  %v1436_v6 = vpop.permute.xlu0 %179  ;;  %v163_v35 = vadd.f32 %v1393_v43, %v117_v60 }
 0x126   :  { %v135_v60 = vadd.f32 %v131_v22, %v1447_v18  ;;  %v319_v14 = vsel %vm309_vm3, %v316_v30, %v318_v4  ;;  %v366_v22 = vmul.f32 %v1472_v40, %v1198_v27 }
 0x127   :  { %913 = vrot.lane.b32.xlu0 %v905_v7, %s1119_s18  ;;  %879 = vrot.lane.b32.xlu1 %v872_v11, %s1119_s18  ;;  %v118_v7 = vadd.f32 %v114_v38, %v104_v1  ;;  %v312_v1 = vsel %vm309_vm3, %v310_v17, %v311_v62  ;;  %v188_v17 = vadd.f32 %v1434_v5, %v126_v9 }
 0x129   :  { %v1458_v26 = vpop.permute.xlu1 %181  ;;  %v1460_v28 = vpop.permute.xlu0 %201  ;;  %v164_v52 = vadd.f32 %v1413_v54, %v118_v7  ;;  %v335_v54 = vmul.f32 %v1455_v23, %v1251_v61  ;;  %v347_v7 = vrot.slane %v333_v51, 1 }
 0x12b   :  { %917 = vrot.lane.b32.xlu0 %v910_v29, %s1119_s18  ;;  %915 = vrot.lane.b32.xlu1 %v907_v33, %s1119_s18  ;;  %v313_v29 = vrot.slane %v299_v59, 1  ;;  %v162_v33 = vadd.f32 %v1391_v42, %v116_v37  ;;  %v332_v42 = vmul.f32 %v1455_v23, %v1238_v53  ;;  %v128_v59 = vadd.f32 %v124_v34, %v1429_v3 }
 0x12c   :  { %v363_v3 = vmul.f32 %v1472_v40, %v1192_v25  ;;  %v350_v5 = vrot.slane %v335_v54, 1  ;;  %v365_v34 = vmul.f32 %v1472_v40, %v1176_v15 }
 0x12d   :  { %v1480_v47 = vpop.permute.xlu1 %203  ;;  %v1482_v48 = vpop.permute.xlu0 %205  ;;  %v314_v45 = vsel %vm309_vm3, %v311_v62, %v313_v29 }
 0x12f   :  { %953 = vrot.lane.b32.xlu0 %v945_v56, %s1119_s18  ;;  %919 = vrot.lane.b32.xlu1 %v912_v57, %s1119_s18  ;;  %v187_v56 = vadd.f32 %v1415_v55, %v125_v8  ;;  %v344_v55 = vsel %vm309_vm3, %v342_v0, %v343_v49  ;;  %v348_v8 = vrot.slane %v334_v50, 1 }
 0x131   :  { %v1497_v11 = vpop.permute.xlu1 %207  ;;  %v228_v12 = vpop.permute.xlu0 %227  ;;  %v349_v9 = vsel %vm309_vm3, %v347_v7, %v348_v8  ;;  %v351_v50 = vsel %vm309_vm3, %v348_v8, %v350_v5 }
 0x132   :  { %v239_v21 = vadd.f32 %v228_v12, %v161_v2  ;;  %v345_v2 = vrot.slane %v332_v42, 1  ;;  %v136_v42 = vadd.f32 %v132_v32, %v1447_v18 }
 0x133   :  { %957 = vrot.lane.b32.xlu0 %v950_v13, %s1119_s18  ;;  %955 = vrot.lane.b32.xlu1 %v947_v24, %s1119_s18 }
 0x134   :  { %v1511_v36 = vadd.f32 %v312_v1, %v239_v21  ;;  %v189_v21 = vadd.f32 %v1436_v6, %v127_v10  ;;  %v133_v1 = vmul.f32 %v1450_v19, %v1176_v15  ;;  %v346_v30 = vsel %vm309_vm3, %v343_v49, %v345_v2 }
 0x135   :  { %v230_v38 = vpop.permute.xlu1 %229  ;;  %v232_v39 = vpop.permute.xlu0 %231  ;;  %v364_v6 = vmul.f32 %v1472_v40, %v1238_v53  ;;  %v375_v10 = vrot.slane %v363_v3, 1 }
 0x136   :  { %v240_v37 = vadd.f32 %v230_v38, %v162_v33  ;;  %v241_v43 = vadd.f32 %v232_v39, %v163_v35  ;;  %v190_v38 = vadd.f32 %v1458_v26, %v128_v59  ;;  %v213_v39 = vadd.f32 %v1460_v28, %v135_v60 }
 0x137   :  { %959 = vrot.lane.b32.xlu1 %v952_v41, %s1119_s18  ;;  %v379_v28 = vrot.slane %v365_v34, 1  ;;  %v367_v59 = vmul.f32 %v1472_v40, %v1251_v61  ;;  %v214_v60 = vadd.f32 %v1480_v47, %v136_v42  ;;  %s1082_s18 = scalar_lea.vmem %s988_s17, 1536 }
 0x138   :  { %v1529_v57 = vadd.f32 %v314_v45, %v240_v37  ;;  %v1531_v58 = vadd.f32 %v317_v46, %v241_v43  ;;  %v137_v37 = vadd.f32 %v133_v1, %v1447_v18  ;;  %v134_v43 = vmul.f32 %v1450_v19, %v1198_v27  ;;  %p1083_p2 = scmp.ne.s32.totalorder %s988_s17, %s1082_s18  ;;  %p1088_p4 = scmp.lt.s32.totalorder %s1082_s18, %s1082_s18 }
 0x139   :  { %v234_v62 = vpop.permute.xlu1 %233  ;;  %v254_v63 = vpop.permute.xlu0 %253  ;;  %v374_v46 = vrot.slane %v362_v31, 1  ;;  %v382_v7 = vrot.slane %v367_v59, 1 }
 0x13a   :  { %v242_v12 = vadd.f32 %v234_v62, %v164_v52  ;;  %v265_v13 = vadd.f32 %v254_v63, %v187_v56  ;;  %v377_v52 = vrot.slane %v364_v6, 1  ;;  %v380_v56 = vrot.slane %v366_v22, 1  ;;  %p1089_p5 = por %p1088_p4, %p1087_p3 }
 0x13b   :  { %v376_v26 = vsel %vm309_vm3, %v374_v46, %v375_v10  ;;  %v215_v62 = vadd.f32 %v1482_v48, %v137_v37 }
 0x13c   :  { %v327_v24 = vadd.f32 %v319_v14, %v242_v12  ;;  %v356_v29 = vadd.f32 %v344_v55, %v265_v13  ;;  %v138_v12 = vadd.f32 %v134_v43, %v1447_v18  ;;  %v378_v54 = vsel %vm309_vm3, %v375_v10, %v377_v52  ;;  %p1090_p6 = pnand %p1089_p5, %p1083_p2 }
 0x13d   :  { %v256_v23 = vpop.permute.xlu1 %255  ;;  %v258_v20 = vpop.permute.xlu0 %257  ;;  %v381_v55 = vsel %vm309_vm3, %v379_v28, %v380_v56  ;;  %v383_v32 = vsel %vm309_vm3, %v380_v56, %v382_v7 }
 0x13e   :  { %v266_v33 = vadd.f32 %v256_v23, %v188_v17  ;;  %v267_v35 = vadd.f32 %v258_v20, %v189_v21  ;;  %v216_v8 = vadd.f32 %v1497_v11, %v138_v12 }
 0x140   :  { %v357_v41 = vadd.f32 %v346_v30, %v266_v33  ;;  %v358_v44 = vadd.f32 %v349_v9, %v267_v35 }
 0x141   :  { %v260_v45 = vpop.permute.xlu1 %259  ;;  %v280_v4 = vpop.permute.xlu0 %279 }
 0x142   :  { %v268_v49 = vadd.f32 %v260_v45, %v190_v38  ;;  %v291_v51 = vadd.f32 %v280_v4, %v213_v39 }
 0x144   :  { %v359_v19 = vadd.f32 %v351_v50, %v268_v49  ;;  %v388_v63 = vadd.f32 %v376_v26, %v291_v51  ;;  %v666_v51 = vstv %s1021_s14 }
 0x145   :  { %v282_v0 = vpop.permute.xlu1 %281  ;;  %v284_v2 = vpop.permute.xlu0 %283  ;;  %v669_v12 = vmul.f32 %v666_v51, %v1238_v53 }
 0x146   :  { %v292_v13 = vadd.f32 %v282_v0, %v214_v60  ;;  %v293_v14 = vadd.f32 %v284_v2, %v215_v62  ;;  %v668_v62 = vmul.f32 %v666_v51, %v1192_v25  ;;  %v667_v2 = vmul.f32 %v666_v51, %v1179_v16 }
 0x148   :  { %v389_v40 = vadd.f32 %v378_v54, %v292_v13  ;;  %v390_v3 = vadd.f32 %v381_v55, %v293_v14 }
 0x149   :  { %v286_v47 = vpop.permute.xlu1 %285  ;;  %v417_v17 = vpop.permute.xlu0 %416 }
 0x14a   :  { %v294_v48 = vadd.f32 %v286_v47, %v216_v8  ;;  %v428_v21 = vadd.f32 %v417_v17, %v1511_v36  ;;  %v680_v8 = vrot.slane %v668_v62, 2 }
 0x14c   :  { %v391_v1 = vadd.f32 %v383_v32, %v294_v48  ;;  %v679_v32 = vrot.slane %v667_v2, 2 }
 0x14d   :  { %v419_v18 = vpop.permute.xlu1 %418  ;;  %v421_v23 = vpop.permute.xlu0 %420 }
 0x14e   :  { %v429_v20 = vadd.f32 %v419_v18, %v1529_v57  ;;  %v430_v30 = vadd.f32 %v421_v23, %v1531_v58  ;;  %v633_v57 = vstv %s1020_s2  ;;  %v698_v18 = vstv %s1022_s15 }
 0x14f   :  { %v635_v58 = vmul.f32 %v633_v57, %v1192_v25  ;;  %v637_v43 = vmul.f32 %v633_v57, %v1176_v15  ;;  %v638_v45 = vmul.f32 %v633_v57, %v1198_v27  ;;  %v639_v28 = vmul.f32 %v633_v57, %v1251_v61 }
 0x151   :  { %v423_v31 = vpop.permute.xlu1 %422  ;;  %v457_v33 = vpop.permute.xlu0 %456  ;;  %v648_v37 = vrot.slane %v635_v58, 2  ;;  %v652_v59 = vrot.slane %v637_v43, 2  ;;  %v653_v60 = vrot.slane %v638_v45, 2  ;;  %v655_v55 = vrot.slane %v639_v28, 2 }
 0x152   :  { %v431_v35 = vadd.f32 %v423_v31, %v327_v24  ;;  %v468_v11 = vadd.f32 %v457_v33, %v356_v29  ;;  %v634_v29 = vmul.f32 %v633_v57, %v1179_v16  ;;  %v672_v31 = vmul.f32 %v666_v51, %v1251_v61 }
 0x153   :  { %v654_v7 = vsel %vm646_vm4, %v652_v59, %v653_v60  ;;  %v681_v33 = vsel %vm646_vm4, %v679_v32, %v680_v8  ;;  %v702_v45 = vmul.f32 %v698_v18, %v1176_v15 }
 0x154   :  { %v647_v49 = vrot.slane %v634_v29, 2 }
 0x155   :  { %v459_v5 = vpop.permute.xlu1 %458  ;;  %v461_v6 = vpop.permute.xlu0 %460 }
 0x156   :  { %v1577_v9 = vadd.f32 %v459_v5, %v357_v41  ;;  %v1579_v10 = vadd.f32 %v461_v6, %v358_v44  ;;  %v636_v44 = vmul.f32 %v633_v57, %v1238_v53  ;;  %v649_v56 = vsel %vm646_vm4, %v647_v49, %v648_v37 }
 0x158   :  { %v650_v26 = vrot.slane %v636_v44, 2  ;;  %v687_v44 = vrot.slane %v672_v31, 2 }
 0x159   :  { %v463_v36 = vpop.permute.xlu1 %462  ;;  %v497_v34 = vpop.permute.xlu0 %496 }
 0x15a   :  { %v1581_v22 = vadd.f32 %v463_v36, %v359_v19  ;;  %v1583_v38 = vadd.f32 %v497_v34, %v388_v63  ;;  %v651_v54 = vsel %vm646_vm4, %v648_v37, %v650_v26  ;;  %v700_v36 = vmul.f32 %v698_v18, %v1192_v25 }
 0x15b   :  { %v701_v37 = vmul.f32 %v698_v18, %v1238_v53 }
 0x15c   :  { %v712_v25 = vrot.slane %v700_v36, 2 }
 0x15d   :  { %v499_v39 = vpop.permute.xlu1 %498  ;;  %v501_v24 = vpop.permute.xlu0 %500  ;;  %v714_v28 = vrot.slane %v701_v37, 2 }
 0x15e   :  { %v1587_v42 = vadd.f32 %v499_v39, %v389_v40  ;;  %v1589_v41 = vadd.f32 %v501_v24, %v390_v3  ;;  %v670_v40 = vmul.f32 %v666_v51, %v1176_v15  ;;  %v671_v3 = vmul.f32 %v666_v51, %v1198_v27 }
 0x15f   :  { %v704_v15 = vmul.f32 %v698_v18, %v1251_v61 }
 0x160   :  { %v684_v5 = vrot.slane %v670_v40, 2  ;;  %v685_v6 = vrot.slane %v671_v3, 2 }
 0x161   :  { %v503_v4 = vpop.permute.xlu1 %502  ;;  %v537_v46 = vpop.permute.xlu0 %536 }
 0x162   :  { %v1594_v50 = vadd.f32 %v503_v4, %v391_v1  ;;  %v548_v52 = vadd.f32 %v537_v46, %v428_v21  ;;  %v682_v1 = vrot.slane %v669_v12, 2  ;;  %v686_v43 = vsel %vm646_vm4, %v684_v5, %v685_v6 }
 0x163   :  { %v703_v4 = vmul.f32 %v698_v18, %v1198_v27  ;;  %v719_v12 = vrot.slane %v704_v15, 2 }
 0x164   :  { %v1599_v19 = vadd.f32 %v649_v56, %v548_v52  ;;  %v683_v24 = vsel %vm646_vm4, %v680_v8, %v682_v1  ;;  %v716_v56 = vrot.slane %v702_v45, 2 }
 0x165   :  { %v539_v63 = vpop.permute.xlu1 %538  ;;  %v541_v0 = vpop.permute.xlu0 %540  ;;  %v717_v59 = vrot.slane %v703_v4, 2 }
 0x166   :  { %v549_v13 = vadd.f32 %v539_v63, %v429_v20  ;;  %v550_v14 = vadd.f32 %v541_v0, %v430_v30  ;;  %v656_v30 = vsel %vm646_vm4, %v653_v60, %v655_v55 }
 0x167   :  { %v720_v61 = vsel %vm646_vm4, %v717_v59, %v719_v12 }
 0x168   :  { %v1607_v47 = vadd.f32 %v651_v54, %v549_v13  ;;  %v1609_v17 = vadd.f32 %v654_v7, %v550_v14 }
 0x169   :  { %v543_v48 = vpop.permute.xlu1 %542  ;;  %v577_v21 = vpop.permute.xlu0 %576 }
 0x16a   :  { %v551_v23 = vadd.f32 %v543_v48, %v431_v35  ;;  %v588_v20 = vadd.f32 %v577_v21, %v468_v11  ;;  %v699_v35 = vmul.f32 %v698_v18, %v1179_v16 }
 0x16c   :  { %v1615_v34 = vadd.f32 %v656_v30, %v551_v23  ;;  %v1617_v57 = vadd.f32 %v681_v33, %v588_v20  ;;  %v711_v26 = vrot.slane %v699_v35, 2 }
 0x16d   :  { %v579_v58 = vpop.permute.xlu1 %578  ;;  %v581_v39 = vpop.permute.xlu0 %580 }
 0x16e   :  { %v589_v11 = vadd.f32 %v579_v58, %v1577_v9  ;;  %v590_v29 = vadd.f32 %v581_v39, %v1579_v10  ;;  %v688_v10 = vsel %vm646_vm4, %v685_v6, %v687_v44  ;;  %v713_v53 = vsel %vm646_vm4, %v711_v26, %v712_v25 }
 0x170   :  { %v694_v46 = vadd.f32 %v683_v24, %v589_v11  ;;  %v695_v49 = vadd.f32 %v686_v43, %v590_v29 }
 0x171   :  { %v583_v51 = vpop.permute.xlu1 %582  ;;  %v617_v52 = vpop.permute.xlu0 %616 }
 0x172   :  { %v591_v16 = vadd.f32 %v583_v51, %v1581_v22  ;;  %v628_v9 = vadd.f32 %v617_v52, %v1583_v38  ;;  %v715_v22 = vsel %vm646_vm4, %v712_v25, %v714_v28  ;;  %v718_v38 = vsel %vm646_vm4, %v716_v56, %v717_v59 }
 0x174   :  { %v696_v60 = vadd.f32 %v688_v10, %v591_v16  ;;  %v725_v27 = vadd.f32 %v713_v53, %v628_v9 }
 0x175   :  { %v619_v62 = vpop.permute.xlu1 %618  ;;  %v621_v63 = vpop.permute.xlu0 %620 }
 0x176   :  { %v629_v0 = vadd.f32 %v619_v62, %v1587_v42  ;;  %v630_v2 = vadd.f32 %v621_v63, %v1589_v41 }
 0x178   :  { %v726_v13 = vadd.f32 %v715_v22, %v629_v0  ;;  %v727_v14 = vadd.f32 %v718_v38, %v630_v2 }
 0x179   :  { %v623_v54 = vpop.permute.xlu1 %622  ;;  %v754_v55 = vpop.permute.xlu0 %753 }
 0x17a   :  { %v631_v7 = vadd.f32 %v623_v54, %v1594_v50  ;;  %v765_v20 = vadd.f32 %v754_v55, %v1599_v19 }
 0x17c   :  { %v728_v8 = vadd.f32 %v720_v61, %v631_v7 }
 0x17d   :  { %v756_v40 = vpop.permute.xlu1 %755  ;;  %v758_v3 = vpop.permute.xlu0 %757 }
 0x17e   :  { %v766_v50 = vadd.f32 %v756_v40, %v1607_v47  ;;  %v767_v5 = vadd.f32 %v758_v3, %v1609_v17 }
 0x181   :  { %v760_v48 = vpop.permute.xlu1 %759  ;;  %v794_v42 = vpop.permute.xlu0 %793 }
 0x182   :  { %v768_v24 = vadd.f32 %v760_v48, %v1615_v34  ;;  %v805_v35 = vadd.f32 %v794_v42, %v1617_v57 }
 0x185   :  { %v796_v21 = vpop.permute.xlu1 %795  ;;  %v798_v41 = vpop.permute.xlu0 %797 }
 0x186   :  { %v806_v44 = vadd.f32 %v796_v21, %v694_v46  ;;  %v807_v17 = vadd.f32 %v798_v41, %v695_v49 }
 0x189   :  { %v800_v32 = vpop.permute.xlu1 %799  ;;  %v834_v1 = vpop.permute.xlu0 %833 }
 0x18a   :  { %v808_v45 = vadd.f32 %v800_v32, %v696_v60  ;;  %v845_v57 = vadd.f32 %v834_v1, %v725_v27 }
 0x18d   :  { %v836_v18 = vpop.permute.xlu1 %835  ;;  %v838_v23 = vpop.permute.xlu0 %837 }
 0x18e   :  { %v846_v46 = vadd.f32 %v836_v18, %v726_v13  ;;  %v847_v49 = vadd.f32 %v838_v23, %v727_v14 }
 0x191   :  { %v840_v30 = vpop.permute.xlu1 %839  ;;  %v874_v31 = vpop.permute.xlu0 %873 }
 0x192   :  { %v885_v33 = vadd.f32 %v874_v31, %v765_v20  ;;  %v848_v53 = vadd.f32 %v840_v30, %v728_v8 }
 0x194   :  { %970 = vst.msk [vmem:[#allocation9] sm:$0xff] %vm969_vm5, %v885_v33 }
 0x195   :  { %v876_v6 = vpop.permute.xlu1 %875  ;;  %v878_v36 = vpop.permute.xlu0 %877 }
 0x196   :  { %v886_v58 = vadd.f32 %v876_v6, %v766_v50  ;;  %v887_v39 = vadd.f32 %v878_v36, %v767_v5 }
 0x198   :  { %971 = vst.msk [vmem:[#allocation9 + $0x8] sm:$0xff] %vm969_vm5, %v886_v58  ;;  %976 = vst.msk [vmem:[#allocation9 + $0x30] sm:$0xff] %vm969_vm5, %v887_v39 }
 0x199   :  { %v880_v19 = vpop.permute.xlu1 %879  ;;  %v914_v11 = vpop.permute.xlu0 %913 }
 0x19a   :  { %v888_v29 = vadd.f32 %v880_v19, %v768_v24  ;;  %v925_v47 = vadd.f32 %v914_v11, %v805_v35 }
 0x19c   :  { %977 = vst.msk [vmem:[#allocation9 + $0x38] sm:$0xff] %vm969_vm5, %v888_v29  ;;  %972 = vst.msk [vmem:[#allocation9 + $0x10] sm:$0xff] %vm969_vm5, %v925_v47 }
 0x19d   :  { %v916_v37 = vpop.permute.xlu1 %915  ;;  %v918_v43 = vpop.permute.xlu0 %917 }
 0x19e   :  { %v926_v25 = vadd.f32 %v916_v37, %v806_v44  ;;  %v927_v34 = vadd.f32 %v918_v43, %v807_v17 }
 0x1a0   :  { %973 = vst.msk [vmem:[#allocation9 + $0x18] sm:$0xff] %vm969_vm5, %v926_v25  ;;  %978 = vst.msk [vmem:[#allocation9 + $0x40] sm:$0xff] %vm969_vm5, %v927_v34 }
 0x1a1   :  { %v920_v4 = vpop.permute.xlu1 %919  ;;  %v954_v51 = vpop.permute.xlu0 %953 }
 0x1a2   :  { %v928_v52 = vadd.f32 %v920_v4, %v808_v45  ;;  %v965_v26 = vadd.f32 %v954_v51, %v845_v57 }
 0x1a4   :  { %979 = vst.msk [vmem:[#allocation9 + $0x48] sm:$0xff] %vm969_vm5, %v928_v52  ;;  %974 = vst.msk [vmem:[#allocation9 + $0x20] sm:$0xff] %vm969_vm5, %v965_v26 }
 0x1a5   :  { %v956_v16 = vpop.permute.xlu1 %955  ;;  %v958_v9 = vpop.permute.xlu0 %957 }
 0x1a6   :  { %v966_v10 = vadd.f32 %v956_v16, %v846_v46  ;;  %v967_v28 = vadd.f32 %v958_v9, %v847_v49 }
 0x1a8   :  { %975 = vst.msk [vmem:[#allocation9 + $0x28] sm:$0xff] %vm969_vm5, %v966_v10  ;;  %980 = vst.msk [vmem:[#allocation9 + $0x50] sm:$0xff] %vm969_vm5, %v967_v28 }
 0x1a9   :  { %v960_v56 = vpop.permute.xlu1 %959 }
 0x1aa   :  { %v968_v59 = vadd.f32 %v960_v56, %v848_v53 }
 0x1ac   :  { %981 = vst.msk [vmem:[#allocation9 + $0x58] sm:$0xff] %vm969_vm5, %v968_v59 }
 0x1ad   :  { %1093 = shalt.err (!%p1090_p6)
}
 0x1ae   :  { %s1094_s21 = scalar_lea.hbm %s1673_s3, 1536 }
 0x1af   :  { %p1095_p7 = scmp.ne.s32.totalorder %s1673_s3, %s1094_s21  ;;  %p1098_p8 = scmp.lt.u32.totalorder %s1094_s21, %s1673_s3 }
 0x1b1   :  { %p1100_p9 = pnand %p1098_p8, %p1095_p7 }
 0x1b3   :  { %1103 = shalt.err (!%p1100_p9)
}
 0x1b4   :  { %993 = dma.vmem_to_hbm [thread:$0]  %s988_s17, 1536, %s1673_s3, [#allocation4], %s1115_s8, %s1115_s8, %s1116_s9  }
 0x1b5   :  { %1110 = dma.done.wait [#allocation4], 1536  }
 0x1b6   :  { %1111 = vsyncadd [#allocation4], 4294965760 }
 0x1b7   :  { %997 = vsyncpa [#allocation3], 1 }
 0x1b8   :  { %998 = vsyncpa [#allocation4], 1 }
 0x1b9   :  { %999 = vsyncpa [#allocation5], 1 }
 0x1ba   :  { %1000 = vsyncpa [#allocation6], 1 }

</bundles_post_ra>
